<compile_context>
chip_gen: v5e
topology: v5e:2x2
jax: 0.10.0
libtpu: 0.0.40
codegen_flags: <defaults>
</compile_context>

<pallas_src>
import jax
import jax.numpy as jnp
import numpy as np
from jax.experimental import pallas as pl
from jax.experimental.pallas import tpu as pltpu


def _round_up(x, m):
    return ((x + m - 1) // m) * m


def gcn_kernel(s_ref, x_ref, w_ref, out_ref, acc_ref):
    # s_ref:   (tile_m, tile_k)   row/col tile of support
    # x_ref:   (tile_k, d_in_p)   matching row-slab of features
    # w_ref:   (d_in_p, d_out_p)  full (padded) weight
    # out_ref: (tile_m, d_out_p)
    # acc_ref: (tile_m, d_in_p)   f32 accumulator for support @ x
    k = pl.program_id(1)

    @pl.when(k == 0)
    def _():
        acc_ref[...] = jnp.zeros_like(acc_ref)

    acc_ref[...] += jnp.dot(s_ref[...], x_ref[...],
                            preferred_element_type=jnp.float32)

    @pl.when(k == pl.num_programs(1) - 1)
    def _():
        out = jnp.dot(acc_ref[...], w_ref[...],
                      preferred_element_type=jnp.float32)
        # F.normalize(p=2, dim=-1): out / max(||out||_2, 1e-12)
        sumsq = jnp.sum(out * out, axis=-1, keepdims=True)
        inv = jax.lax.rsqrt(jnp.maximum(sumsq, 1e-24))   # EUP slot, off the VPU path
        out = out * inv
        out_ref[...] = jnp.maximum(out, 0.0).astype(out_ref.dtype)


def _default_tiles():
    # tile_m matched to MXU height; tile_k sized for HBM streaming of support.
    try:
        kind = jax.devices()[0].device_kind.lower()
    except Exception:
        kind = ""
    if "v5 lite" in kind or "v5e" in kind or "v5lite" in kind:
        return 128, 512          # v5e: 4x128^2 MXU, ~16 MiB scoped-VMEM default
    return 256, 1024             # v6e / v7x: 2x256^2 MXU


def graph_convolution(x, support, weight, *, tile_m=None, tile_k=None):
    """(support @ x) @ W, then per-row L2-normalize and ReLU (GraphConvolution fwd)."""
    N, d_in = x.shape
    d_out = weight.shape[1]
    assert support.shape == (N, N)

    dm, dk = _default_tiles()
    tile_m = dm if tile_m is None else tile_m
    tile_k = dk if tile_k is None else tile_k

    # Shrink tiles for small problems while keeping sublane/lane alignment.
    tile_m = min(tile_m, _round_up(N, 8))
    tile_k = min(tile_k, _round_up(N, 128))

    # Lane-dense (multiple-of-128) padded feature dims; zero padding does not
    # change the result (extra rows/cols are exact zeros, sliced off at the end).
    d_in_p = _round_up(d_in, 128)
    d_out_p = _round_up(d_out, 128)
    n_m = _round_up(N, tile_m)        # output / support-row padding
    n_k = _round_up(N, tile_k)        # contraction padding

    s_p = jnp.pad(support, ((0, n_m - N), (0, n_k - N)))
    x_p = jnp.pad(x, ((0, n_k - N), (0, d_in_p - d_in)))
    w_p = jnp.pad(weight, ((0, d_in_p - d_in), (0, d_out_p - d_out)))

    grid = (n_m // tile_m, n_k // tile_k)

    # Double-buffered in/out tiles + resident accumulator, with headroom.
    vmem_bytes = 4 * (2 * (tile_m * tile_k + tile_k * d_in_p
                           + d_in_p * d_out_p + tile_m * d_out_p)
                      + tile_m * d_in_p)
    vmem_limit = int(min(max(2 * vmem_bytes, 32 * 1024 * 1024),
                         48 * 1024 * 1024))   # stay under v7x's 64 MiB physical VMEM

    out_p = pl.pallas_call(
        gcn_kernel,
        out_shape=jax.ShapeDtypeStruct((n_m, d_out_p), x.dtype),
        grid_spec=pltpu.PrefetchScalarGridSpec(
            num_scalar_prefetch=0,
            grid=grid,
            in_specs=[
                pl.BlockSpec((tile_m, tile_k), lambda i, k: (i, k)),    # support tile
                pl.BlockSpec((tile_k, d_in_p), lambda i, k: (k, 0)),    # x slab
                pl.BlockSpec((d_in_p, d_out_p), lambda i, k: (0, 0)),   # full W
            ],
            out_specs=pl.BlockSpec((tile_m, d_out_p), lambda i, k: (i, 0)),
            scratch_shapes=[pltpu.VMEM((tile_m, d_in_p), jnp.float32)],
        ),
        compiler_params=pltpu.CompilerParams(
            dimension_semantics=("parallel", "arbitrary"),
            vmem_limit_bytes=vmem_limit,
        ),
    )(s_p, x_p, w_p)

    return out_p[:N, :d_out]


def reference(x, support, weight):
    out = (support @ x) @ weight
    norm = jnp.sqrt(jnp.sum(out * out, axis=-1, keepdims=True))
    out = out / jnp.maximum(norm, 1e-12)
    return jnp.maximum(out, 0.0)


if __name__ == "__main__":
    N, D_IN, D_OUT = 256, 32, 64
    key = jax.random.PRNGKey(0)
    kx, ka, kw = jax.random.split(key, 3)

    x = jax.random.normal(kx, (N, D_IN), dtype=jnp.float32)

    # Symmetric, row-normalized dense "support" (adjacency with self loops).
    a = (jax.random.uniform(ka, (N, N)) > 0.9).astype(jnp.float32)
    a = jnp.maximum(a, a.T) + jnp.eye(N, dtype=jnp.float32)
    support = a / jnp.sum(a, axis=-1, keepdims=True)

    # xavier_uniform init for weight (input_dim, output_dim), deterministic.
    limit = float(np.sqrt(6.0 / (D_IN + D_OUT)))
    weight = jax.random.uniform(kw, (D_IN, D_OUT),
                                minval=-limit, maxval=limit,
                                dtype=jnp.float32)

    ref = reference(x, support, weight)

    # 1) explicit small tiles -> exercises multi-step K reduction + multiple row tiles
    out_tiled = graph_convolution(x, support, weight, tile_m=128, tile_k=128)
    out_tiled = jax.block_until_ready(out_tiled)
    np.testing.assert_allclose(np.asarray(out_tiled), np.asarray(ref),
                               rtol=1e-5, atol=1e-5)

    # 2) device-default (MXU-sized) tiles
    out_default = graph_convolution(x, support, weight)
    out_default = jax.block_until_ready(out_default)
    np.testing.assert_allclose(np.asarray(out_default), np.asarray(ref),
                               rtol=1e-5, atol=1e-5)

    print("KERNEL_OK")
</pallas_src>

<mosaic_0001>
module attributes {stable_mosaic.version = 11 : i64} {
  func.func @gcn_kernel(%arg0: i32, %arg1: i32, %arg2: memref<128x128xf32, #tpu.memory_space<vmem>>, %arg3: memref<128x128xf32, #tpu.memory_space<vmem>>, %arg4: memref<128x128xf32, #tpu.memory_space<vmem>>, %arg5: memref<128x128xf32, #tpu.memory_space<vmem>>, %arg6: memref<128x128xf32, #tpu.memory_space<vmem>>) attributes {dimension_semantics = [#tpu.dimension_semantics<parallel>, #tpu.dimension_semantics<arbitrary>], iteration_bounds = array<i64: 2, 2>, scalar_prefetch = 0 : i64, scratch_operands = 1 : i64, tpu.core_type = #tpu.core_type<tc>, window_params = [{transform_indices = @transform_0, window_bounds = array<i64: 128, 128>}, {transform_indices = @transform_1, window_bounds = array<i64: 128, 128>}, {pipeline_mode = #tpu.pipeline_mode<synchronous>, transform_indices = @transform_2, window_bounds = array<i64: 128, 128>}, {transform_indices = @transform_3, window_bounds = array<i64: 128, 128>}]} {
    %c0_i32 = arith.constant 0 : i32
    %0 = arith.cmpi eq, %arg1, %c0_i32 : i32
    %1 = arith.extui %0 : i1 to i32
    %c0_i32_0 = arith.constant 0 : i32
    %2 = arith.cmpi ne, %1, %c0_i32_0 : i32
    scf.if %2 {
      %cst_9 = arith.constant 0.000000e+00 : f32
      %12 = vector.broadcast %cst_9 : f32 to vector<128x128xf32>
      %c0_10 = arith.constant 0 : index
      %c0_11 = arith.constant 0 : index
      %13 = vector.load %arg6[%c0_10, %c0_11] : memref<128x128xf32, #tpu.memory_space<vmem>>, vector<128x128xf32>
      tpu.vector_store %arg6[%c0_10, %c0_11], %12 {strides = array<i32>} : memref<128x128xf32, #tpu.memory_space<vmem>>, vector<128x128xf32>,
    } else {
    }
    %c0 = arith.constant 0 : index
    %c0_1 = arith.constant 0 : index
    %3 = vector.load %arg6[%c0, %c0_1] : memref<128x128xf32, #tpu.memory_space<vmem>>, vector<128x128xf32>
    %c0_2 = arith.constant 0 : index
    %c0_3 = arith.constant 0 : index
    %4 = vector.load %arg2[%c0_2, %c0_3] : memref<128x128xf32, #tpu.memory_space<vmem>>, vector<128x128xf32>
    %c0_4 = arith.constant 0 : index
    %c0_5 = arith.constant 0 : index
    %5 = vector.load %arg3[%c0_4, %c0_5] : memref<128x128xf32, #tpu.memory_space<vmem>>, vector<128x128xf32>
    %cst = arith.constant dense<0.000000e+00> : vector<128x128xf32>
    %6 = tpu.matmul %4, %5, %cst {dimension_numbers = #tpu.dot_dimension_numbers<[1], [0], [0], [1], [0, 0, 1, 1], [], []>} : vector<128x128xf32>, vector<128x128xf32>, vector<128x128xf32> -> vector<128x128xf32>
    %7 = arith.addf %3, %6 : vector<128x128xf32>
    %c0_6 = arith.constant 0 : index
    %c0_7 = arith.constant 0 : index
    %8 = vector.load %arg6[%c0_6, %c0_7] : memref<128x128xf32, #tpu.memory_space<vmem>>, vector<128x128xf32>
    tpu.vector_store %arg6[%c0_6, %c0_7], %7 {strides = array<i32>} : memref<128x128xf32, #tpu.memory_space<vmem>>, vector<128x128xf32>,
    %c1_i32 = arith.constant 1 : i32
    %9 = arith.cmpi eq, %arg1, %c1_i32 : i32
    %10 = arith.extui %9 : i1 to i32
    %c0_i32_8 = arith.constant 0 : i32
    %11 = arith.cmpi ne, %10, %c0_i32_8 : i32
    scf.if %11 {
      %c0_9 = arith.constant 0 : index
      %c0_10 = arith.constant 0 : index
      %12 = vector.load %arg6[%c0_9, %c0_10] : memref<128x128xf32, #tpu.memory_space<vmem>>, vector<128x128xf32>
      %c0_11 = arith.constant 0 : index
      %c0_12 = arith.constant 0 : index
      %13 = vector.load %arg4[%c0_11, %c0_12] : memref<128x128xf32, #tpu.memory_space<vmem>>, vector<128x128xf32>
      %cst_13 = arith.constant dense<0.000000e+00> : vector<128x128xf32>
      %14 = tpu.matmul %12, %13, %cst_13 {dimension_numbers = #tpu.dot_dimension_numbers<[1], [0], [0], [1], [0, 0, 1, 1], [], []>} : vector<128x128xf32>, vector<128x128xf32>, vector<128x128xf32> -> vector<128x128xf32>
      %15 = arith.mulf %14, %14 : vector<128x128xf32>
      %cst_14 = arith.constant dense<0.000000e+00> : vector<128xf32>
      %16 = vector.multi_reduction <add>, %15, %cst_14 [1] : vector<128x128xf32> to vector<128xf32>
      %17 = vector.shape_cast %16 : vector<128xf32> to vector<128x1xf32>
      %cst_15 = arith.constant 1.000000e-24 : f32
      %18 = vector.broadcast %cst_15 : f32 to vector<128x1xf32>
      %19 = arith.maximumf %17, %18 : vector<128x1xf32>
      %20 = math.rsqrt %19 : vector<128x1xf32>
      %21 = vector.broadcast %20 : vector<128x1xf32> to vector<128x128xf32>
      %22 = arith.mulf %14, %21 : vector<128x128xf32>
      %cst_16 = arith.constant 0.000000e+00 : f32
      %23 = vector.broadcast %cst_16 : f32 to vector<128x128xf32>
      %24 = arith.maximumf %22, %23 : vector<128x128xf32>
      %c0_17 = arith.constant 0 : index
      %c0_18 = arith.constant 0 : index
      %25 = vector.load %arg5[%c0_17, %c0_18] : memref<128x128xf32, #tpu.memory_space<vmem>>, vector<128x128xf32>
      tpu.vector_store %arg5[%c0_17, %c0_18], %24 {strides = array<i32>} : memref<128x128xf32, #tpu.memory_space<vmem>>, vector<128x128xf32>,
    } else {
    }
    return
  }
  func.func @transform_0(%arg0: i32, %arg1: i32) -> (i32, i32) {
    %c0_i32 = arith.constant 0 : i32
    return %arg0, %arg1 : i32, i32
  }
  func.func @transform_1(%arg0: i32, %arg1: i32) -> (i32, i32) {
    %c0_i32 = arith.constant 0 : i32
    %c0_i32_0 = arith.constant 0 : i32
    return %arg1, %c0_i32 : i32, i32
  }
  func.func @transform_2(%arg0: i32, %arg1: i32) -> (i32, i32) {
    %c0_i32 = arith.constant 0 : i32
    %c0_i32_0 = arith.constant 0 : i32
    %c0_i32_1 = arith.constant 0 : i32
    return %c0_i32, %c0_i32_0 : i32, i32
  }
  func.func @transform_3(%arg0: i32, %arg1: i32) -> (i32, i32) {
    %c0_i32 = arith.constant 0 : i32
    %c0_i32_0 = arith.constant 0 : i32
    return %arg0, %c0_i32 : i32, i32
  }
}

</mosaic_0001>

<bundles_post_ra>
// kernel: tpu_custom_call.1
= control target key start
LH: loop header
LB: loop body
LE: loop exit
PB: predicated region body
PF: predicated region fallthrough
CT: control target
= control target key end

     0   :  { %s2042_s0 = inlined_call_operand.hbm [shape: f32[256,256], index: 0, kind: input, shape index: {}]   ;;  %s2043_s1 = inlined_call_operand.hbm [shape: f32[256,128], index: 1, kind: input, shape index: {}]   ;;  %s2044_s2 = inlined_call_operand.hbm [shape: f32[128,128], index: 2, kind: input, shape index: {}]   ;;  %s2045_s3 = inlined_call_operand.hbm [shape: f32[256,128], index: 3, kind: output, shape index: {}]  }
   0x1   :  { %2060 = sst [smem:[#allocation25_spill]] %s2042_s0 }
   0x2   :  { %2061 = sst [smem:[#allocation26_spill]] %s2044_s2 }
   0x3   :  { %2062 = sst [smem:[#allocation27_spill]] %s2045_s3 }
   0x4   :  { %8 = vsyncpa [#allocation4], 0 }
   0x5   :  { %10 = vsyncpa [#allocation4 + $0x1], 0 }
   0x6   :  { %11 = vsyncpa [#allocation7], 0 }
   0x7   :  { %13 = vsyncpa [#allocation7 + $0x1], 0 }
   0x8   :  { %14 = vsyncpa [#allocation5], 0 }
   0x9   :  { %16 = vsyncpa [#allocation5 + $0x1], 0  ;;  %s1516_s12 = smov 0   ;;  %s1518_s13 = smov 0  }
   0xa   :  { %s1520_s14 = smov 0   ;;  %s1522_s15 = smov 0  }
   0xb   :  { %s1524_s16 = smov 0   ;;  %s1526_s17 = smov 0  }
   0xc   :  { %s1528_s18 = smov 0   ;;  %s1530_s19 = smov 0  }
   0xd   :  { %s1532_s20 = smov 0   ;;  %s1534_s21 = smov 0  }
   0xe   :  { %s1536_s22 = smov 0   ;;  %s1538_s23 = smov 0  }
   0xf   :  { %s1540_s24 = smov 0   ;;  %s1542_s25 = smov 0  }
  0x10 LB: > { %2063 = sst [smem:[#allocation14_spill]] %s1435_s12  ;;  %s1583_s26 = sadd.s32 4294967295, %s1487_s25   ;;  %s1487_s25 = sphi %s1542_s25, %s22_s25   ;;  %s1483_s24 = sphi %s1540_s24, %s2110_s24   ;;  %s1479_s23 = sphi %s1538_s23, %s2109_s23   ;;  %s1475_s22 = sphi %s1536_s22, %s2108_s22   ;;  %s1471_s21 = sphi %s1534_s21, %s2107_s21   ;;  %s1467_s20 = sphi %s1532_s20, %s2096_s20   ;;  %s1463_s19 = sphi %s1530_s19, %s2106_s19   ;;  %s1459_s18 = sphi %s1528_s18, %s2105_s18   ;;  %s1455_s17 = sphi %s1526_s17, %s2104_s17   ;;  %s1451_s16 = sphi %s1524_s16, %s2103_s16   ;;  %s1447_s15 = sphi %s1522_s15, %s2102_s15   ;;  %s1443_s14 = sphi %s1520_s14, %s2094_s14   ;;  %s1439_s13 = sphi %s1518_s13, %s2101_s13   ;;  %s1435_s12 = sphi %s1516_s12, %s2100_s12  }
  0x11   : > { %2064 = sst [smem:[#allocation15_spill]] %s1443_s14  ;;  %s941_s27 = sadd.s32 4294967294, %s1487_s25  }
  0x12   : > { %2065 = sst [smem:[#allocation16_spill]] %s1467_s20  ;;  %p56_p0 = scmp.ne.s32.totalorder %s1463_s19, %s1459_s18 }
  0x13   : > { %2066 = sst [smem:[#allocation17_spill]] %s1475_s22  ;;  %p57_p1 = scmp.eq.s32.totalorder %s1583_s26, 0 }
  0x14   : > { %2067 = sst [smem:[#allocation18_spill]] %s1483_s24  ;;  %p82_p2 = scmp.ne.s32.totalorder %s1451_s16, %s1447_s15 }
  0x15   : > { %p126_p3 = scmp.ne.s32.totalorder %s1443_s14, %s1439_s13  ;;  %p1593_p4 = por %p57_p1, %p56_p0 }
  0x16   : > { %p127_p5 = scmp.eq.s32.totalorder %s1583_s26, 3  ;;  %p1600_p6 = por %p82_p2, %p57_p1 }
  0x17   : > { %p132_p7 = scmp.ne.s32.totalorder %s1439_s13, %s1435_s12  ;;  %p133_p9 = scmp.eq.s32.totalorder %s941_s27, 3 }
  0x18   : > { %p1606_p8 = por %p127_p5, %p126_p3  ;;  %p942_p10 = scmp.ge.s32.totalorder %s1487_s25, 1 }
  0x19   : > { %p140_p11 = scmp.lt.s32.totalorder %s1487_s25, 5  ;;  %p1612_p12 = por %p133_p9, %p132_p7 }
  0x1a   : > { %s2070_s30 = scalar_select %p1606_p8, 1, 0 }
  0x1b   : > { %s2072_s4 = scalar_select %p1612_p12, 1, 0 }
  0x1c   : > { %2071 = sst [smem:[#allocation19_spill]] %s2070_s30  ;;  %p1616_p13 = pnand %p942_p10, %p140_p11 }
  0x1d   : > { %2073 = sst [smem:[#allocation20_spill]] %s2072_s4  ;;  %s1489_s9 = smov [#allocation8]  }
  0x1e   : > { %s2075_s2 = sld [smem:[#allocation26_spill]]  ;;  %p1073_p0 = pneg %p1616_p13 }
  0x1f   : > { %s153_s10 = sshll.u32 %s1489_s9, 4  ;;  %s2046_s11 = smov 128   ;;  %s154_s10 = int_to_ptr.vmem [resolvable:$true] %s153_s10 }
  0x20   : > { %p1074_p2 = pnand %p1073_p0, %p57_p1  ;;  %s2048_s15 = smov 8  }
  0x21   : > { %s31_s18 = sadd.s32 1, %s1479_s23  ;;  %s34_s27 = sadd.s32 1, %s1483_s24 }
  0x22   : > { %p32_p3 = scmp.ge.s32.totalorder %s31_s18, 2  ;;  %s43_s6 = sadd.s32 1, %s1467_s20 }
  0x23   : > { %p50_p5 = scmp.ne.s32.totalorder %s1467_s20, %s1463_s19  ;;  %p51_p7 = scmp.eq.s32.totalorder %s1487_s25, 0 }
  0x24   : > { %s151_s8 = sshll.u32 %s2075_s2, 4  ;;  %s2112_s18 = smov (%p32_p3, %s31_s18), 0  ;;  %s152_s8 = int_to_ptr.hbm [resolvable:$true] %s151_s8 }
  0x25   : > { %1076 = dma.hbm_to_vmem [thread:$0]  (!%p1074_p2), %s152_s8, 2048, %s154_s10, [#allocation7], %s2046_s11, %s2046_s11, %s2048_s15  }
  0x26   : > { %2076 = sst [smem:[#allocation21_spill]] %s2112_s18  ;;  %s2114_s27 = smov (!%p32_p3, %s34_s27), %s1483_s24 }
  0x27   : > { %s1641_s7 = ssub.s32 %s1479_s23, %s2112_s18  ;;  %p1645_p9 = por %p51_p7, %p50_p5 }
  0x28   : > { %p36_p10 = scmp.ge.s32.totalorder %s2114_s27, 2  ;;  %p67_p11 = scmp.eq.s32.totalorder %s1641_s7, 0 }
  0x29   : > { %s116_s9 = sadd.s32 1, %s1443_s14  ;;  %p1089_p0 = scmp.lt.s32.totalorder %s1487_s25, 4 }
  0x2a   : > { %s2116_s27 = smov (%p36_p10, %s2114_s27), 0  ;;  %s167_s10 = sand.u32 1, %s1467_s20  }
  0x2b   : > { %2078 = sst [smem:[#allocation22_spill]] %s2116_s27  ;;  %s964_s11 = sshll.u32 %s1483_s24, 5 }
  0x2c   : > { %s38_s15 = ssub.s32 %s1483_s24, %s2116_s27  ;;  %s945_s18 = sshll.u32 %s167_s10, 7 }
  0x2d   : > { %s40_s2 = sor.u32 %s1641_s7, %s38_s15  ;;  %p114_p2 = scmp.eq.s32.totalorder %s38_s15, 0 }
  0x2e   : > { %p41_p3 = scmp.eq.s32.totalorder %s40_s2, 0  ;;  %s176_s3 = sadd.s32 %s1479_s23, %s964_s11 }
  0x2f   : > { %s1660_s4 = scalar_select %p114_p2, %s1443_s14, %s116_s9  }
  0x30   : > { %s1663_s12 = scalar_select %p41_p3, %s1467_s20, %s43_s6  }
  0x31   : > { %2079 = sst [smem:[#allocation23_spill]] %s1660_s4  ;;  %s948_s30 = sshll.u32 %s176_s3, 3 }
  0x32   : > { %2080 = sst [smem:[#allocation24_spill]] %s1663_s12  ;;  %s171_s22 = scalar_lea.vmem [#allocation3], %s945_s18 }
  0x33   : > { %s181_s27 = sshll.u32 %s171_s22, 4  ;;  %s2081_s0 = sld [smem:[#allocation25_spill]]  ;;  %s182_s27 = int_to_ptr.vmem [resolvable:$true] %s181_s27 }
  0x34   : > { %p1078_p5 = pnand %p1089_p0, %p1645_p9  ;;  %s168_s6 = scalar_lea.sflag [#allocation4], %s167_s10 }
  0x35   : > { %s1492_s12 = smov 256   ;;  %s2082_s20 = smov 8  }
  0x36   : > { %s2083_s11 = smov 128   ;;  %s191_s3 = sand.u32 1, %s1487_s25  }
  0x37   : > { %s69_s18 = sadd.s32 1, %s1455_s17  ;;  %p76_p10 = scmp.ne.s32.totalorder %s1455_s17, %s1451_s16 }
  0x38   : > { %s1682_s22 = scalar_select %p67_p11, %s1455_s17, %s69_s18  }
  0x39   : > { %s178_s24 = scalar_lea.hbm %s2081_s0, %s948_s30  ;;  %p78_p2 = por %p76_p10, %p51_p7 }
  0x3a   : > { %s179_s9 = sshll.u32 %s178_s24, 4  ;;  %s193_s30 = sand.u32 1, %s1455_s17   ;;  %s180_s9 = int_to_ptr.hbm [resolvable:$true] %s179_s9 }
  0x3b   : > { %1080 = dma.hbm_to_vmem [thread:$0]  (!%p1078_p5), %s180_s9, 2048, %s182_s27, %s168_s6, %s1492_s12, %s2083_s11, %s2082_s20  }
  0x3c   : > { %s965_s24 = sshll.u32 %s1479_s23, 7  ;;  %s949_s8 = sshll.u32 %s193_s30, 7 }
  0x3d   : > { %s200_s10 = scalar_lea.hbm %s2043_s1, %s965_s24  ;;  %s195_s4 = scalar_lea.vmem [#allocation6], %s949_s8 }
  0x3e   : > { %s201_s0 = sshll.u32 %s200_s10, 4  ;;  %s203_s14 = sshll.u32 %s195_s4, 4  ;;  %s202_s0 = int_to_ptr.hbm [resolvable:$true] %s201_s0  ;;  %s204_s14 = int_to_ptr.vmem [resolvable:$true] %s203_s14 }
  0x3f   : > { %p1081_p9 = pnand %p1089_p0, %p78_p2  ;;  %s192_s12 = scalar_lea.sflag [#allocation7], %s191_s3 }
  0x40   : > { %215 = sbr.rel (%p1616_p13) target bundleno = 663 (0x297), region = 32  ;;  %s217_s27 = sand.u32 (!%p1616_p13), 1, %s1463_s19  }
  0x41   : > { %1083 = dma.hbm_to_vmem [thread:$0]  (!%p1081_p9), %s202_s0, 2048, %s204_s14, %s192_s12, %s2083_s11, %s2083_s11, %s2082_s20  }
  0x42   : > { %s953_s7 = sshll.u32 (!%p1616_p13), %s217_s27, 7  ;;  %s218_s9 = scalar_lea.sflag (!%p1616_p13), [#allocation4], %s217_s27 }
  0x43   : > { %s1699_s6 = scalar_lea.vmem (!%p1616_p13), [#allocation3], %s953_s7 }
  0x45   : > { %1418 = dma.done.wait (%p1593_p4), %s218_s9, 2048  }
  0x46   : > { %1420 = vsyncadd (%p1593_p4), %s218_s9, 4294965248  ;;  %s227_s4 = sand.u32 1, %s1583_s26   ;;  %s229_s0 = sand.u32 1, %s1451_s16  }
  0x47   : > { %s954_s14 = sshll.u32 %s229_s0, 7  ;;  %s228_s20 = scalar_lea.sflag [#allocation7], %s227_s4 }
  0x48   : > { %s1707_s5 = scalar_lea.vmem [#allocation6], %s954_s14 }
  0x49   : > { %1422 = dma.done.wait (%p1600_p6), %s228_s20, 2048  }
  0x4a   : > { %1424 = vsyncadd (%p1600_p6), %s228_s20, 4294965248 }
  0x4b   : > { %1426 = dma.done.wait (%p57_p1), [#allocation7], 2048  }
  0x4c   : > { %1428 = vsyncadd (%p57_p1), [#allocation7], 4294965248  ;;  %s262_s28 = sand.u32 1, %s1439_s13   ;;  %p957_p4 = scmp.ne.s32.totalorder %s1471_s21, 0 }
  0x4d   : > { %s956_s11 = sshll.u32 %s262_s28, 7 }
  0x4e   : > { %s1720_s3 = scalar_lea.vmem [#allocation9], %s956_s11  ;;  %271 = sbr.rel (%p957_p4) target bundleno = 100 (0x64), region = 48 }
  0x53   : > { %v1493_v0 = vmov 0.0  }
  0x54   : > { %272 = vst [vmem:[#allocation2 + $0x30] sm:$0xff] %v1493_v0 }
  0x55   : > { %273 = vst [vmem:[#allocation2] sm:$0xff] %v1493_v0 }
  0x56   : > { %274 = vst [vmem:[#allocation2 + $0x58] sm:$0xff] %v1493_v0 }
  0x57   : > { %275 = vst [vmem:[#allocation2 + $0x18] sm:$0xff] %v1493_v0 }
  0x58   : > { %276 = vst [vmem:[#allocation2 + $0x50] sm:$0xff] %v1493_v0 }
  0x59   : > { %277 = vst [vmem:[#allocation2 + $0x68] sm:$0xff] %v1493_v0 }
  0x5a   : > { %278 = vst [vmem:[#allocation2 + $0x8] sm:$0xff] %v1493_v0 }
  0x5b   : > { %279 = vst [vmem:[#allocation2 + $0x48] sm:$0xff] %v1493_v0 }
  0x5c   : > { %280 = vst [vmem:[#allocation2 + $0x40] sm:$0xff] %v1493_v0 }
  0x5d   : > { %281 = vst [vmem:[#allocation2 + $0x20] sm:$0xff] %v1493_v0 }
  0x5e   : > { %282 = vst [vmem:[#allocation2 + $0x10] sm:$0xff] %v1493_v0 }
  0x5f   : > { %283 = vst [vmem:[#allocation2 + $0x38] sm:$0xff] %v1493_v0 }
  0x60   : > { %284 = vst [vmem:[#allocation2 + $0x60] sm:$0xff] %v1493_v0 }
  0x61   : > { %285 = vst [vmem:[#allocation2 + $0x70] sm:$0xff] %v1493_v0 }
  0x62   : > { %286 = vst [vmem:[#allocation2 + $0x78] sm:$0xff] %v1493_v0 }
  0x63   : > { %287 = vst [vmem:[#allocation2 + $0x28] sm:$0xff] %v1493_v0 }
  0x64 PF: > { %v335_v1 = vld [vmem:[%s1707_s5 + $0x78] sm:$0xff]  ;;  %v334_v2 = vld [vmem:[%s1707_s5 + $0x70] sm:$0xff]  ;;  %v333_v3 = vld [vmem:[%s1707_s5 + $0x68] sm:$0xff]  ;;  %p958_p1 = scmp.ne.s32.totalorder %s1471_s21, 1 }
  0x65   : > { %968 = vmatpush.msra.mxu2 %v335_v1  ;;  %969 = vmatpush.msra.mxu3 %v335_v1  ;;  %v332_v4 = vld [vmem:[%s1707_s5 + $0x60] sm:$0xff]  ;;  %v331_v5 = vld [vmem:[%s1707_s5 + $0x58] sm:$0xff]  ;;  %v330_v6 = vld [vmem:[%s1707_s5 + $0x50] sm:$0xff] }
  0x66   : > { %336 = vmatpush.msra.mxu0 %v335_v1  ;;  %967 = vmatpush.msra.mxu1 %v335_v1  ;;  %v329_v7 = vld [vmem:[%s1707_s5 + $0x48] sm:$0xff]  ;;  %v328_v8 = vld [vmem:[%s1707_s5 + $0x40] sm:$0xff]  ;;  %v327_v9 = vld [vmem:[%s1707_s5 + $0x38] sm:$0xff] }
  0x67   : > { %971 = vmatpush.msra.mxu2 %v334_v2  ;;  %972 = vmatpush.msra.mxu3 %v334_v2  ;;  %v326_v10 = vld [vmem:[%s1707_s5 + $0x30] sm:$0xff]  ;;  %v325_v11 = vld [vmem:[%s1707_s5 + $0x28] sm:$0xff]  ;;  %v324_v12 = vld [vmem:[%s1707_s5 + $0x20] sm:$0xff] }
  0x68   : > { %337 = vmatpush.msra.mxu0 %v334_v2  ;;  %970 = vmatpush.msra.mxu1 %v334_v2  ;;  %v323_v13 = vld [vmem:[%s1707_s5 + $0x18] sm:$0xff]  ;;  %v322_v14 = vld [vmem:[%s1707_s5 + $0x10] sm:$0xff]  ;;  %v321_v15 = vld [vmem:[%s1707_s5 + $0x8] sm:$0xff] }
  0x69   : > { %974 = vmatpush.msra.mxu2 %v333_v3  ;;  %975 = vmatpush.msra.mxu3 %v333_v3  ;;  %v320_v16 = vld [vmem:[%s1707_s5] sm:$0xff]  ;;  %v313_v21 = vld [vmem:[%s1699_s6 + $0x48] sm:$0xff]  ;;  %v314_v25 = vld [vmem:[%s1699_s6 + $0x50] sm:$0xff] }
  0x6a   : > { %338 = vmatpush.msra.mxu0 %v333_v3  ;;  %973 = vmatpush.msra.mxu1 %v333_v3  ;;  %v312_v17 = vld [vmem:[%s1699_s6 + $0x40] sm:$0xff]  ;;  %v317_v22 = vld [vmem:[%s1699_s6 + $0x68] sm:$0xff]  ;;  %v318_v26 = vld [vmem:[%s1699_s6 + $0x70] sm:$0xff] }
  0x6b   : > { %977 = vmatpush.msra.mxu2 %v332_v4  ;;  %978 = vmatpush.msra.mxu3 %v332_v4  ;;  %v316_v18 = vld [vmem:[%s1699_s6 + $0x60] sm:$0xff]  ;;  %v305_v23 = vld [vmem:[%s1699_s6 + $0x8] sm:$0xff]  ;;  %v306_v27 = vld [vmem:[%s1699_s6 + $0x10] sm:$0xff] }
  0x6c   : > { %339 = vmatpush.msra.mxu0 %v332_v4  ;;  %976 = vmatpush.msra.mxu1 %v332_v4  ;;  %v304_v19 = vld [vmem:[%s1699_s6] sm:$0xff]  ;;  %v309_v24 = vld [vmem:[%s1699_s6 + $0x28] sm:$0xff]  ;;  %v310_v28 = vld [vmem:[%s1699_s6 + $0x30] sm:$0xff] }
  0x6d   : > { %980 = vmatpush.msra.mxu2 %v331_v5  ;;  %981 = vmatpush.msra.mxu3 %v331_v5  ;;  %v308_v20 = vld [vmem:[%s1699_s6 + $0x20] sm:$0xff]  ;;  %v315_v29 = vld [vmem:[%s1699_s6 + $0x58] sm:$0xff]  ;;  %v288_v33 = vld [vmem:[#allocation2 + $0x30] sm:$0xff] }
  0x6e   : > { %340 = vmatpush.msra.mxu0 %v331_v5  ;;  %979 = vmatpush.msra.mxu1 %v331_v5  ;;  %v319_v30 = vld [vmem:[%s1699_s6 + $0x78] sm:$0xff]  ;;  %v292_v34 = vld [vmem:[#allocation2 + $0x50] sm:$0xff]  ;;  %v296_v39 = vld [vmem:[#allocation2 + $0x40] sm:$0xff] }
  0x6f   : > { %983 = vmatpush.msra.mxu2 %v330_v6  ;;  %984 = vmatpush.msra.mxu3 %v330_v6  ;;  %v307_v31 = vld [vmem:[%s1699_s6 + $0x18] sm:$0xff]  ;;  %v300_v40 = vld [vmem:[#allocation2 + $0x60] sm:$0xff]  ;;  %v293_v46 = vld [vmem:[#allocation2 + $0x68] sm:$0xff] }
  0x70   : > { %341 = vmatpush.msra.mxu0 %v330_v6  ;;  %982 = vmatpush.msra.mxu1 %v330_v6  ;;  %v311_v32 = vld [vmem:[%s1699_s6 + $0x38] sm:$0xff]  ;;  %v289_v45 = vld [vmem:[#allocation2] sm:$0xff]  ;;  %v301_v52 = vld [vmem:[#allocation2 + $0x70] sm:$0xff] }
  0x71   : > { %986 = vmatpush.msra.mxu2 %v329_v7  ;;  %987 = vmatpush.msra.mxu3 %v329_v7  ;;  %v297_v51 = vld [vmem:[#allocation2 + $0x20] sm:$0xff]  ;;  %v290_v57 = vld [vmem:[#allocation2 + $0x58] sm:$0xff]  ;;  %v294_v58 = vld [vmem:[#allocation2 + $0x8] sm:$0xff] }
  0x72   : > { %342 = vmatpush.msra.mxu0 %v329_v7  ;;  %985 = vmatpush.msra.mxu1 %v329_v7  ;;  %v298_v63 = vld [vmem:[#allocation2 + $0x10] sm:$0xff]  ;;  %v302_v0 = vld [vmem:[#allocation2 + $0x78] sm:$0xff]  ;;  %v295_v6 = vld [vmem:[#allocation2 + $0x48] sm:$0xff] }
  0x73   : > { %989 = vmatpush.msra.mxu2 %v328_v8  ;;  %990 = vmatpush.msra.mxu3 %v328_v8  ;;  %v291_v5 = vld [vmem:[#allocation2 + $0x18] sm:$0xff] }
  0x74   : > { %343 = vmatpush.msra.mxu0 %v328_v8  ;;  %988 = vmatpush.msra.mxu1 %v328_v8 }
  0x75   : > { %992 = vmatpush.msra.mxu2 %v327_v9  ;;  %993 = vmatpush.msra.mxu3 %v327_v9 }
  0x76   : > { %344 = vmatpush.msra.mxu0 %v327_v9  ;;  %991 = vmatpush.msra.mxu1 %v327_v9 }
  0x77   : > { %995 = vmatpush.msra.mxu2 %v326_v10  ;;  %996 = vmatpush.msra.mxu3 %v326_v10 }
  0x78   : > { %345 = vmatpush.msra.mxu0 %v326_v10  ;;  %994 = vmatpush.msra.mxu1 %v326_v10 }
  0x79   : > { %998 = vmatpush.msra.mxu2 %v325_v11  ;;  %999 = vmatpush.msra.mxu3 %v325_v11 }
  0x7a   : > { %346 = vmatpush.msra.mxu0 %v325_v11  ;;  %997 = vmatpush.msra.mxu1 %v325_v11  ;;  %v299_v11 = vld [vmem:[#allocation2 + $0x38] sm:$0xff] }
  0x7b   : > { %1001 = vmatpush.msra.mxu2 %v324_v12  ;;  %1002 = vmatpush.msra.mxu3 %v324_v12 }
  0x7c   : > { %347 = vmatpush.msra.mxu0 %v324_v12  ;;  %1000 = vmatpush.msra.mxu1 %v324_v12  ;;  %v303_v12 = vld [vmem:[#allocation2 + $0x28] sm:$0xff] }
  0x7d   : > { %1004 = vmatpush.msra.mxu2 %v323_v13  ;;  %1005 = vmatpush.msra.mxu3 %v323_v13 }
  0x7e   : > { %348 = vmatpush.msra.mxu0 %v323_v13  ;;  %1003 = vmatpush.msra.mxu1 %v323_v13 }
  0x7f   : > { %1007 = vmatpush.msra.mxu2 %v322_v14  ;;  %1008 = vmatpush.msra.mxu3 %v322_v14 }
  0x80   : > { %349 = vmatpush.msra.mxu0 %v322_v14  ;;  %1006 = vmatpush.msra.mxu1 %v322_v14 }
  0x81   : > { %1010 = vmatpush.msra.mxu2 %v321_v15  ;;  %1011 = vmatpush.msra.mxu3 %v321_v15 }
  0x82   : > { %350 = vmatpush.msra.mxu0 %v321_v15  ;;  %1009 = vmatpush.msra.mxu1 %v321_v15 }
  0x83   : > { %1013 = vmatpush.msra.mxu2 %v320_v16  ;;  %1014 = vmatpush.msra.mxu3 %v320_v16 }
  0x84   : > { %376 = vmatmul.f32.vlgmr.msra.gmra.mxu2 %v312_v17  ;;  %388 = vmatmul.f32.vlgmr.msra.gmra.mxu3 %v316_v18 }
  0x85   : > { %351 = vmatpush.msra.mxu0 %v320_v16  ;;  %1012 = vmatpush.msra.mxu1 %v320_v16 }
  0x86   : > { %352 = vmatmul.f32.vlgmr.msra.gmra.mxu0 %v304_v19  ;;  %364 = vmatmul.f32.vlgmr.msra.gmra.mxu1 %v308_v20 }
  0x8c   : > { %379 = vmatmul.f32.gmra.mxu2 %v313_v21  ;;  %391 = vmatmul.f32.gmra.mxu3 %v317_v22 }
  0x8e   : > { %355 = vmatmul.f32.gmra.mxu0 %v305_v23  ;;  %367 = vmatmul.f32.gmra.mxu1 %v309_v24 }
  0x94   : > { %382 = vmatmul.f32.gmra.mxu2 %v314_v25  ;;  %394 = vmatmul.f32.gmra.mxu3 %v318_v26 }
  0x96   : > { %358 = vmatmul.f32.gmra.mxu0 %v306_v27  ;;  %370 = vmatmul.f32.gmra.mxu1 %v310_v28 }
  0x9c   : > { %385 = vmatmul.f32.gmra.mxu2 %v315_v29  ;;  %397 = vmatmul.f32.gmra.mxu3 %v319_v30 }
  0x9e   : > { %361 = vmatmul.f32.gmra.mxu0 %v307_v31  ;;  %373 = vmatmul.f32.gmra.mxu1 %v311_v32 }
 0x103   : > { %v353_v35 = vpop.f32.mrf.mxu0  ;;  %v365_v36 = vpop.f32.mrf.mxu1 }
 0x104   : > { %v401_v37 = vadd.f32 %v353_v35, %v288_v33  ;;  %v405_v38 = vadd.f32 %v365_v36, %v292_v34 }
 0x106   : > { %417 = vst [vmem:[#allocation2 + $0x30] sm:$0xff] %v401_v37 }
 0x107   : > { %421 = vst [vmem:[#allocation2 + $0x50] sm:$0xff] %v405_v38  ;;  %v377_v41 = vpop.f32.mrf.mxu2  ;;  %v389_v42 = vpop.f32.mrf.mxu3 }
 0x108   : > { %v409_v43 = vadd.f32 %v377_v41, %v296_v39  ;;  %v413_v44 = vadd.f32 %v389_v42, %v300_v40 }
 0x10a   : > { %425 = vst [vmem:[#allocation2 + $0x40] sm:$0xff] %v409_v43 }
 0x10b   : > { %429 = vst [vmem:[#allocation2 + $0x60] sm:$0xff] %v413_v44  ;;  %v356_v47 = vpop.f32.mrf.mxu0  ;;  %v368_v48 = vpop.f32.mrf.mxu1 }
 0x10c   : > { %v402_v49 = vadd.f32 %v356_v47, %v289_v45  ;;  %v406_v50 = vadd.f32 %v368_v48, %v293_v46 }
 0x10e   : > { %418 = vst [vmem:[#allocation2] sm:$0xff] %v402_v49 }
 0x10f   : > { %422 = vst [vmem:[#allocation2 + $0x68] sm:$0xff] %v406_v50  ;;  %v380_v53 = vpop.f32.mrf.mxu2  ;;  %v392_v54 = vpop.f32.mrf.mxu3 }
 0x110   : > { %v410_v55 = vadd.f32 %v380_v53, %v297_v51  ;;  %v414_v56 = vadd.f32 %v392_v54, %v301_v52 }
 0x112   : > { %426 = vst [vmem:[#allocation2 + $0x20] sm:$0xff] %v410_v55 }
 0x113   : > { %430 = vst [vmem:[#allocation2 + $0x70] sm:$0xff] %v414_v56  ;;  %v359_v59 = vpop.f32.mrf.mxu0  ;;  %v371_v60 = vpop.f32.mrf.mxu1 }
 0x114   : > { %v403_v61 = vadd.f32 %v359_v59, %v290_v57  ;;  %v407_v62 = vadd.f32 %v371_v60, %v294_v58 }
 0x116   : > { %419 = vst [vmem:[#allocation2 + $0x58] sm:$0xff] %v403_v61 }
 0x117   : > { %423 = vst [vmem:[#allocation2 + $0x8] sm:$0xff] %v407_v62  ;;  %v383_v1 = vpop.f32.mrf.mxu2  ;;  %v395_v2 = vpop.f32.mrf.mxu3 }
 0x118   : > { %v411_v3 = vadd.f32 %v383_v1, %v298_v63  ;;  %v415_v4 = vadd.f32 %v395_v2, %v302_v0 }
 0x11a   : > { %427 = vst [vmem:[#allocation2 + $0x10] sm:$0xff] %v411_v3 }
 0x11b   : > { %431 = vst [vmem:[#allocation2 + $0x78] sm:$0xff] %v415_v4  ;;  %v362_v7 = vpop.f32.mrf.mxu0  ;;  %v374_v8 = vpop.f32.mrf.mxu1 }
 0x11c   : > { %v404_v9 = vadd.f32 %v362_v7, %v291_v5  ;;  %v408_v10 = vadd.f32 %v374_v8, %v295_v6 }
 0x11e   : > { %420 = vst [vmem:[#allocation2 + $0x18] sm:$0xff] %v404_v9 }
 0x11f   : > { %424 = vst [vmem:[#allocation2 + $0x48] sm:$0xff] %v408_v10  ;;  %v386_v13 = vpop.f32.mrf.mxu2  ;;  %v398_v14 = vpop.f32.mrf.mxu3  ;;  %436 = sbr.rel (%p958_p1) target bundleno = 641 (0x281), region = 52 }
 0x120   : > { %v412_v15 = vadd.f32 %v386_v13, %v299_v11  ;;  %v416_v16 = vadd.f32 %v398_v14, %v303_v12 }
 0x122   : > { %428 = vst [vmem:[#allocation2 + $0x38] sm:$0xff] %v412_v15 }
 0x123   : > { %432 = vst [vmem:[#allocation2 + $0x28] sm:$0xff] %v416_v16 }
 0x124   : > { %v468_v17 = vld [vmem:[#allocation8 + $0x78] sm:$0xff]  ;;  %v467_v18 = vld [vmem:[#allocation8 + $0x70] sm:$0xff]  ;;  %v466_v19 = vld [vmem:[#allocation8 + $0x68] sm:$0xff] }
 0x125   : > { %469 = vmatpush.msra.mxu0 %v468_v17  ;;  %1015 = vmatpush.msra.mxu1 %v468_v17  ;;  %v465_v20 = vld [vmem:[#allocation8 + $0x60] sm:$0xff]  ;;  %v464_v21 = vld [vmem:[#allocation8 + $0x58] sm:$0xff]  ;;  %v463_v22 = vld [vmem:[#allocation8 + $0x50] sm:$0xff] }
 0x126   : > { %1016 = vmatpush.msra.mxu2 %v468_v17  ;;  %1017 = vmatpush.msra.mxu3 %v468_v17  ;;  %v462_v23 = vld [vmem:[#allocation8 + $0x48] sm:$0xff]  ;;  %v461_v24 = vld [vmem:[#allocation8 + $0x40] sm:$0xff]  ;;  %v460_v25 = vld [vmem:[#allocation8 + $0x38] sm:$0xff] }
 0x127   : > { %470 = vmatpush.msra.mxu0 %v467_v18  ;;  %1018 = vmatpush.msra.mxu1 %v467_v18  ;;  %v459_v26 = vld [vmem:[#allocation8 + $0x30] sm:$0xff]  ;;  %v458_v27 = vld [vmem:[#allocation8 + $0x28] sm:$0xff]  ;;  %v457_v28 = vld [vmem:[#allocation8 + $0x20] sm:$0xff] }
 0x128   : > { %1019 = vmatpush.msra.mxu2 %v467_v18  ;;  %1020 = vmatpush.msra.mxu3 %v467_v18  ;;  %v456_v29 = vld [vmem:[#allocation8 + $0x18] sm:$0xff]  ;;  %v455_v30 = vld [vmem:[#allocation8 + $0x10] sm:$0xff]  ;;  %v454_v31 = vld [vmem:[#allocation8 + $0x8] sm:$0xff] }
 0x129   : > { %471 = vmatpush.msra.mxu0 %v466_v19  ;;  %1021 = vmatpush.msra.mxu1 %v466_v19  ;;  %v453_v32 = vld [vmem:[#allocation8] sm:$0xff]  ;;  %v437_v33 = vld [vmem:[#allocation2 + $0x30] sm:$0xff]  ;;  %v442_v39 = vld [vmem:[#allocation2 + $0x68] sm:$0xff] }
 0x12a   : > { %1022 = vmatpush.msra.mxu2 %v466_v19  ;;  %1023 = vmatpush.msra.mxu3 %v466_v19  ;;  %v441_v34 = vld [vmem:[#allocation2 + $0x50] sm:$0xff]  ;;  %v445_v35 = vld [vmem:[#allocation2 + $0x40] sm:$0xff]  ;;  %v439_v41 = vld [vmem:[#allocation2 + $0x58] sm:$0xff] }
 0x12b   : > { %472 = vmatpush.msra.mxu0 %v465_v20  ;;  %1024 = vmatpush.msra.mxu1 %v465_v20  ;;  %v449_v36 = vld [vmem:[#allocation2 + $0x60] sm:$0xff]  ;;  %v450_v40 = vld [vmem:[#allocation2 + $0x70] sm:$0xff]  ;;  %v443_v43 = vld [vmem:[#allocation2 + $0x8] sm:$0xff] }
 0x12c   : > { %1025 = vmatpush.msra.mxu2 %v465_v20  ;;  %1026 = vmatpush.msra.mxu3 %v465_v20  ;;  %v438_v37 = vld [vmem:[#allocation2] sm:$0xff]  ;;  %v447_v42 = vld [vmem:[#allocation2 + $0x10] sm:$0xff]  ;;  %v451_v44 = vld [vmem:[#allocation2 + $0x78] sm:$0xff] }
 0x12d   : > { %473 = vmatpush.msra.mxu0 %v464_v21  ;;  %1027 = vmatpush.msra.mxu1 %v464_v21  ;;  %v446_v38 = vld [vmem:[#allocation2 + $0x20] sm:$0xff]  ;;  %v440_v45 = vld [vmem:[#allocation2 + $0x18] sm:$0xff]  ;;  %v444_v47 = vld [vmem:[#allocation2 + $0x48] sm:$0xff] }
 0x12e   : > { %1028 = vmatpush.msra.mxu2 %v464_v21  ;;  %1029 = vmatpush.msra.mxu3 %v464_v21  ;;  %v448_v46 = vld [vmem:[#allocation2 + $0x38] sm:$0xff]  ;;  %v452_v48 = vld [vmem:[#allocation2 + $0x28] sm:$0xff] }
 0x12f   : > { %474 = vmatpush.msra.mxu0 %v463_v22  ;;  %1030 = vmatpush.msra.mxu1 %v463_v22 }
 0x130   : > { %1031 = vmatpush.msra.mxu2 %v463_v22  ;;  %1032 = vmatpush.msra.mxu3 %v463_v22 }
 0x131   : > { %475 = vmatpush.msra.mxu0 %v462_v23  ;;  %1033 = vmatpush.msra.mxu1 %v462_v23 }
 0x132   : > { %1034 = vmatpush.msra.mxu2 %v462_v23  ;;  %1035 = vmatpush.msra.mxu3 %v462_v23 }
 0x133   : > { %476 = vmatpush.msra.mxu0 %v461_v24  ;;  %1036 = vmatpush.msra.mxu1 %v461_v24 }
 0x134   : > { %1037 = vmatpush.msra.mxu2 %v461_v24  ;;  %1038 = vmatpush.msra.mxu3 %v461_v24 }
 0x135   : > { %477 = vmatpush.msra.mxu0 %v460_v25  ;;  %1039 = vmatpush.msra.mxu1 %v460_v25 }
 0x136   : > { %1040 = vmatpush.msra.mxu2 %v460_v25  ;;  %1041 = vmatpush.msra.mxu3 %v460_v25 }
 0x137   : > { %478 = vmatpush.msra.mxu0 %v459_v26  ;;  %1042 = vmatpush.msra.mxu1 %v459_v26 }
 0x138   : > { %1043 = vmatpush.msra.mxu2 %v459_v26  ;;  %1044 = vmatpush.msra.mxu3 %v459_v26 }
 0x139   : > { %479 = vmatpush.msra.mxu0 %v458_v27  ;;  %1045 = vmatpush.msra.mxu1 %v458_v27 }
 0x13a   : > { %1046 = vmatpush.msra.mxu2 %v458_v27  ;;  %1047 = vmatpush.msra.mxu3 %v458_v27 }
 0x13b   : > { %480 = vmatpush.msra.mxu0 %v457_v28  ;;  %1048 = vmatpush.msra.mxu1 %v457_v28 }
 0x13c   : > { %1049 = vmatpush.msra.mxu2 %v457_v28  ;;  %1050 = vmatpush.msra.mxu3 %v457_v28 }
 0x13d   : > { %481 = vmatpush.msra.mxu0 %v456_v29  ;;  %1051 = vmatpush.msra.mxu1 %v456_v29 }
 0x13e   : > { %1052 = vmatpush.msra.mxu2 %v456_v29  ;;  %1053 = vmatpush.msra.mxu3 %v456_v29 }
 0x13f   : > { %482 = vmatpush.msra.mxu0 %v455_v30  ;;  %1054 = vmatpush.msra.mxu1 %v455_v30 }
 0x140   : > { %1055 = vmatpush.msra.mxu2 %v455_v30  ;;  %1056 = vmatpush.msra.mxu3 %v455_v30 }
 0x141   : > { %483 = vmatpush.msra.mxu0 %v454_v31  ;;  %1057 = vmatpush.msra.mxu1 %v454_v31 }
 0x142   : > { %1058 = vmatpush.msra.mxu2 %v454_v31  ;;  %1059 = vmatpush.msra.mxu3 %v454_v31 }
 0x143   : > { %484 = vmatpush.msra.mxu0 %v453_v32  ;;  %1060 = vmatpush.msra.mxu1 %v453_v32 }
 0x144   : > { %1061 = vmatpush.msra.mxu2 %v453_v32  ;;  %485 = vmatmul.f32.vlgmr.msra.gmra.mxu0 %v437_v33 }
 0x145   : > { %497 = vmatmul.f32.vlgmr.msra.gmra.mxu1 %v441_v34  ;;  %509 = vmatmul.f32.vlgmr.msra.gmra.mxu2 %v445_v35 }
 0x146   : > { %1062 = vmatpush.msra.mxu3 %v453_v32 }
 0x147   : > { %521 = vmatmul.f32.vlgmr.msra.gmra.mxu3 %v449_v36 }
 0x14c   : > { %488 = vmatmul.f32.gmra.mxu0 %v438_v37 }
 0x14d   : > { %512 = vmatmul.f32.gmra.mxu2 %v446_v38  ;;  %500 = vmatmul.f32.gmra.mxu1 %v442_v39 }
 0x14f   : > { %524 = vmatmul.f32.gmra.mxu3 %v450_v40 }
 0x154   : > { %491 = vmatmul.f32.gmra.mxu0 %v439_v41 }
 0x155   : > { %515 = vmatmul.f32.gmra.mxu2 %v447_v42  ;;  %503 = vmatmul.f32.gmra.mxu1 %v443_v43 }
 0x157   : > { %527 = vmatmul.f32.gmra.mxu3 %v451_v44 }
 0x15c   : > { %494 = vmatmul.f32.gmra.mxu0 %v440_v45 }
 0x15d   : > { %518 = vmatmul.f32.gmra.mxu2 %v448_v46  ;;  %506 = vmatmul.f32.gmra.mxu1 %v444_v47 }
 0x15f   : > { %530 = vmatmul.f32.gmra.mxu3 %v452_v48 }
 0x1c1   : > { %v1756_v49 = vpop.f32.mrf.mxu0 }
 0x1c2   : > { %v1758_v50 = vpop.f32.mrf.mxu1  ;;  %v534_v51 = vmul.f32 %v1756_v49, %v1756_v49 }
 0x1c3   : > { %v538_v52 = vmul.f32 %v1758_v50, %v1758_v50 }
 0x1c4   : > { %550 = vadd.xlane.f32.xlu0 %v534_v51 }
 0x1c5   : > { %558 = vadd.xlane.f32.xlu2 %v538_v52 }
 0x1c8   : > { %v1764_v53 = vpop.f32.mrf.mxu2 }
 0x1c9   : > { %v1766_v54 = vpop.f32.mrf.mxu0  ;;  %v542_v55 = vmul.f32 %v1764_v53, %v1764_v53 }
 0x1ca   : > { %v1770_v56 = vpop.f32.mrf.mxu3  ;;  %v1774_v58 = vpop.f32.mrf.mxu1  ;;  %v535_v0 = vmul.f32 %v1766_v54, %v1766_v54 }
 0x1cb   : > { %v546_v57 = vmul.f32 %v1770_v56, %v1770_v56  ;;  %v539_v61 = vmul.f32 %v1774_v58, %v1774_v58 }
 0x1cd   : > { %566 = vadd.xlane.f32.xlu2 %v542_v55  ;;  %574 = vadd.xlane.f32.xlu0 %v546_v57 }
 0x1d0   : > { %v1776_v59 = vpop.f32.mrf.mxu2 }
 0x1d1   : > { %v1778_v60 = vpop.f32.mrf.mxu0  ;;  %v543_v3 = vmul.f32 %v1776_v59, %v1776_v59 }
 0x1d2   : > { %v536_v62 = vmul.f32 %v1778_v60, %v1778_v60  ;;  %v1784_v63 = vpop.f32.mrf.mxu3  ;;  %v1794_v4 = vpop.f32.mrf.mxu1 }
 0x1d3   : > { %v540_v10 = vmul.f32 %v1794_v4, %v1794_v4  ;;  %v547_v16 = vmul.f32 %v1784_v63, %v1784_v63 }
 0x1d4   : > { %554 = vadd.xlane.f32.xlu1 %v536_v62 }
 0x1d5   : > { %560 = vadd.xlane.f32.xlu2 %v539_v61  ;;  %552 = vadd.xlane.f32.xlu0 %v535_v0 }
 0x1d8   : > { %v1788_v1 = vpop.f32.mrf.mxu2 }
 0x1d9   : > { %v544_v2 = vmul.f32 %v1788_v1, %v1788_v1  ;;  %v1798_v6 = vpop.f32.mrf.mxu0 }
 0x1da   : > { %v1796_v5 = vpop.f32.mrf.mxu3  ;;  %v537_v8 = vmul.f32 %v1798_v6, %v1798_v6  ;;  %v1808_v11 = vpop.f32.mrf.mxu1 }
 0x1db   : > { %v548_v13 = vmul.f32 %v1796_v5, %v1796_v5  ;;  %v541_v14 = vmul.f32 %v1808_v11, %v1808_v11 }
 0x1dc   : > { %570 = vadd.xlane.f32.xlu1 %v544_v2 }
 0x1dd   : > { %568 = vadd.xlane.f32.xlu0 %v543_v3 }
 0x1e0   : > { %v1800_v7 = vpop.f32.mrf.mxu2 }
 0x1e1   : > { %v545_v9 = vmul.f32 %v1800_v7, %v1800_v7 }
 0x1e2   : > { %v1810_v12 = vpop.f32.mrf.mxu3 }
 0x1e3   : > { %572 = vadd.xlane.f32.xlu2 %v545_v9  ;;  %v549_v15 = vmul.f32 %v1810_v12, %v1810_v12 }
 0x1e4   : > { %556 = vadd.xlane.f32.xlu1 %v537_v8 }
 0x1e5   : > { %562 = vadd.xlane.f32.xlu0 %v540_v10 }
 0x1eb   : > { %578 = vadd.xlane.f32.xlu2 %v548_v13 }
 0x1ec   : > { %564 = vadd.xlane.f32.xlu1 %v541_v14 }
 0x1ed   : > { %580 = vadd.xlane.f32.xlu0 %v549_v15 }
 0x1f4   : > { %576 = vadd.xlane.f32.xlu1 %v547_v16 }
 0x237   : > { %v551_v17 = vpop.xlane.xlu0 %550 }
 0x238   : > { %v559_v18 = vpop.xlane.xlu2 %558  ;;  %v582_v19 = vmax.f32 %v551_v17, 1e-24 }
 0x239   : > { %v586_v20 = vmax.f32 %v559_v18, 1e-24 }
 0x23a   : > { %1211 = vrsqrt.f32 %v582_v19  ;;  %vm604_vm4 = vweird.f32 %v582_v19 }
 0x23b   : > { %1213 = vrsqrt.f32 %v586_v20  ;;  %vm644_vm0 = vweird.f32 %v586_v20 }
 0x240   : > { %v1212_v21 = vpop.eup %1211  ;;  %v567_v22 = vpop.xlane.xlu2 %566 }
 0x241   : > { %v575_v23 = vpop.xlane.xlu0 %574  ;;  %v1214_v24 = vpop.eup %1213  ;;  %v599_v25 = vmul.f32 %v1212_v21, %v582_v19  ;;  %v590_v26 = vmax.f32 %v567_v22, 1e-24  ;;  %vm605_vm2 = vweird.f32 %v1212_v21 }
 0x242   : > { %v1820_v27 = vmax.f32 %v575_v23, 1e-24  ;;  %v639_v28 = vmul.f32 %v1214_v24, %v586_v20  ;;  %vm645_vm1 = vweird.f32 %v1214_v24  ;;  %vm606_vm5 = vmor %vm604_vm4, %vm605_vm2 }
 0x243   : > { %v600_v29 = vmul.f32 %v1212_v21, %v599_v25  ;;  %1215 = vrsqrt.f32 %v590_v26  ;;  %vm1825_vm3 = vmor %vm644_vm0, %vm645_vm1  ;;  %vm684_vm9 = vweird.f32 %v590_v26 }
 0x244   : > { %v640_v30 = vmul.f32 %v1214_v24, %v639_v28  ;;  %1217 = vrsqrt.f32 %v1820_v27  ;;  %vm724_vm7 = vweird.f32 %v1820_v27 }
 0x245   : > { %v601_v31 = vmul.f32 0.5, %v600_v29 }
 0x246   : > { %v641_v32 = vmul.f32 0.5, %v640_v30 }
 0x247   : > { %v602_v33 = vsub.f32 1.5, %v601_v31  ;;  %v555_v34 = vpop.xlane.xlu1 %554 }
 0x248   : > { %v642_v35 = vsub.f32 1.5, %v641_v32  ;;  %v561_v36 = vpop.xlane.xlu2 %560  ;;  %v1823_v38 = vmax.f32 %v555_v34, 1e-24 }
 0x249   : > { %v553_v37 = vpop.xlane.xlu0 %552  ;;  %v1216_v39 = vpop.eup %1215  ;;  %v603_v41 = vmul.f32 %v1212_v21, %v602_v33  ;;  %v1829_v42 = vmax.f32 %v561_v36, 1e-24 }
 0x24a   : > { %v1831_v43 = vmax.f32 %v553_v37, 1e-24  ;;  %v1218_v44 = vpop.eup %1217  ;;  %v643_v45 = vmul.f32 %v1214_v24, %v642_v35  ;;  %v679_v46 = vmul.f32 %v1216_v39, %v590_v26  ;;  %1219 = vrsqrt.f32 %v1823_v38 }
 0x24b   : > { %v607_v47 = vsel %vm606_vm5, %v1212_v21, %v603_v41  ;;  %v719_v48 = vmul.f32 %v1218_v44, %v1820_v27  ;;  %1221 = vrsqrt.f32 %v1829_v42  ;;  %vm685_vm6 = vweird.f32 %v1216_v39 }
 0x24c   : > { %v647_v51 = vsel %vm1825_vm3, %v1214_v24, %v643_v45  ;;  %v758_v52 = vmul.f32 %v607_v47, %v1756_v49  ;;  %v680_v55 = vmul.f32 %v1216_v39, %v679_v46  ;;  %1223 = vrsqrt.f32 %v1831_v43  ;;  %vm686_vm10 = vmor %vm684_vm9, %vm685_vm6 }
 0x24d   : > { %v762_v57 = vmul.f32 %v647_v51, %v1758_v50  ;;  %v720_v61 = vmul.f32 %v1218_v44, %v719_v48  ;;  %vm725_vm8 = vweird.f32 %v1218_v44  ;;  %vm654_vm12 = vweird.f32 %v1829_v42 }
 0x24e   : > { %v774_v62 = vmax.f32 %v758_v52, 0.0  ;;  %v681_v0 = vmul.f32 0.5, %v680_v55  ;;  %vm726_vm11 = vmor %vm724_vm7, %vm725_vm8  ;;  %vm624_vm13 = vweird.f32 %v1823_v38  ;;  %vm614_vm3 = vweird.f32 %v1831_v43 }
 0x24f   : > { %v778_v2 = vmax.f32 %v762_v57, 0.0  ;;  %v721_v3 = vmul.f32 0.5, %v720_v61  ;;  %v571_v8 = vpop.xlane.xlu1 %570 }
 0x250   : > { %v1841_v9 = vpop.eup %1219  ;;  %790 = vst [vmem:[%s1720_s3] sm:$0xff] %v774_v62  ;;  %v682_v10 = vsub.f32 1.5, %v681_v0  ;;  %v1845_v13 = vmax.f32 %v571_v8, 1e-24 }
 0x251   : > { %v569_v49 = vpop.xlane.xlu0 %568  ;;  %v1222_v50 = vpop.eup %1221  ;;  %794 = vst [vmem:[%s1720_s3 + $0x20] sm:$0xff] %v778_v2  ;;  %v722_v14 = vsub.f32 1.5, %v721_v3  ;;  %v619_v15 = vmul.f32 %v1841_v9, %v1823_v38  ;;  %vm625_vm14 = vweird.f32 %v1841_v9 }
 0x252   : > { %v1850_v16 = vmax.f32 %v569_v49, 1e-24  ;;  %v683_v17 = vmul.f32 %v1216_v39, %v682_v10  ;;  %v649_v18 = vmul.f32 %v1222_v50, %v1829_v42  ;;  %1225 = vrsqrt.f32 %v1845_v13  ;;  %v1854_v19 = vpop.eup %1223  ;;  %vm626_vm1 = vmor %vm624_vm13, %vm625_vm14 }
 0x253   : > { %v723_v20 = vmul.f32 %v1218_v44, %v722_v14  ;;  %v620_v21 = vmul.f32 %v1841_v9, %v619_v15  ;;  %v609_v24 = vmul.f32 %v1854_v19, %v1831_v43  ;;  %vm655_vm15 = vweird.f32 %v1222_v50 }
 0x254   : > { %1227 = vrsqrt.f32 %v1850_v16  ;;  %v687_v22 = vsel %vm686_vm10, %v1216_v39, %v683_v17  ;;  %v650_v23 = vmul.f32 %v1222_v50, %v649_v18  ;;  %vm615_vm0 = vweird.f32 %v1854_v19  ;;  %vm656_vm2 = vmor %vm654_vm12, %vm655_vm15 }
 0x255   : > { %v766_v25 = vmul.f32 %v687_v22, %v1764_v53  ;;  %v727_v26 = vsel %vm726_vm11, %v1218_v44, %v723_v20  ;;  %v621_v28 = vmul.f32 0.5, %v620_v21  ;;  %v610_v31 = vmul.f32 %v1854_v19, %v609_v24  ;;  %vm616_vm4 = vmor %vm614_vm3, %vm615_vm0 }
 0x256   : > { %v770_v29 = vmul.f32 %v727_v26, %v1770_v56  ;;  %v651_v30 = vmul.f32 0.5, %v650_v23  ;;  %v573_v27 = vpop.xlane.xlu2 %572  ;;  %vm694_vm5 = vweird.f32 %v1850_v16  ;;  %vm704_vm8 = vweird.f32 %v1845_v13 }
 0x257   : > { %v782_v32 = vmax.f32 %v766_v25, 0.0  ;;  %v622_v33 = vsub.f32 1.5, %v621_v28  ;;  %v1869_v34 = vmax.f32 %v573_v27, 1e-24  ;;  %v557_v53 = vpop.xlane.xlu1 %556  ;;  %v611_v56 = vmul.f32 0.5, %v610_v31 }
 0x258   : > { %v1871_v35 = vpop.eup %1225  ;;  %v786_v36 = vmax.f32 %v770_v29, 0.0  ;;  %v652_v37 = vsub.f32 1.5, %v651_v30  ;;  %v1888_v48 = vmax.f32 %v557_v53, 1e-24 }
 0x259   : > { %v563_v39 = vpop.xlane.xlu0 %562  ;;  %798 = vst [vmem:[%s1720_s3 + $0x40] sm:$0xff] %v782_v32  ;;  %v623_v41 = vmul.f32 %v1841_v9, %v622_v33  ;;  %v699_v44 = vmul.f32 %v1871_v35, %v1845_v13  ;;  %1229 = vrsqrt.f32 %v1869_v34  ;;  %v612_v46 = vsub.f32 1.5, %v611_v56 }
 0x25a   : > { %v1873_v40 = vpop.eup %1227  ;;  %802 = vst [vmem:[%s1720_s3 + $0x60] sm:$0xff] %v786_v36  ;;  %v653_v45 = vmul.f32 %v1222_v50, %v652_v37  ;;  %v1896_v55 = vmax.f32 %v563_v39, 1e-24  ;;  %vm705_vm6 = vweird.f32 %v1871_v35  ;;  %vm714_vm11 = vweird.f32 %v1869_v34 }
 0x25b   : > { %v689_v47 = vmul.f32 %v1873_v40, %v1850_v16  ;;  %v627_v51 = vsel %vm626_vm1, %v1841_v9, %v623_v41  ;;  %v700_v52 = vmul.f32 %v1871_v35, %v699_v44  ;;  %v613_v38 = vmul.f32 %v1854_v19, %v612_v46  ;;  %vm706_vm9 = vmor %vm704_vm8, %vm705_vm6 }
 0x25c   : > { %v657_v57 = vsel %vm656_vm2, %v1222_v50, %v653_v45  ;;  %v760_v61 = vmul.f32 %v627_v51, %v1778_v60  ;;  %1231 = vrsqrt.f32 %v1896_v55  ;;  %vm695_vm7 = vweird.f32 %v1873_v40 }
 0x25d   : > { %v690_v62 = vmul.f32 %v1873_v40, %v689_v47  ;;  %v763_v0 = vmul.f32 %v657_v57, %v1774_v58  ;;  %v701_v42 = vmul.f32 0.5, %v700_v52  ;;  %v617_v43 = vsel %vm616_vm4, %v1854_v19, %v613_v38  ;;  %vm696_vm10 = vmor %vm694_vm5, %vm695_vm7 }
 0x25e   : > { %v776_v2 = vmax.f32 %v760_v61, 0.0  ;;  %1233 = vrsqrt.f32 %v1888_v48  ;;  %v579_v60 = vpop.xlane.xlu2 %578  ;;  %v759_v58 = vmul.f32 %v617_v43, %v1766_v54  ;;  %vm664_vm0 = vweird.f32 %v1896_v55 }
 0x25f   : > { %v691_v3 = vmul.f32 0.5, %v690_v62  ;;  %v1230_v8 = vpop.eup %1229  ;;  %v779_v9 = vmax.f32 %v763_v0, 0.0  ;;  %v702_v10 = vsub.f32 1.5, %v701_v42  ;;  %v565_v49 = vpop.xlane.xlu1 %564  ;;  %v1913_v15 = vmax.f32 %v579_v60, 1e-24 }
 0x260   : > { %792 = vst [vmem:[%s1720_s3 + $0x10] sm:$0xff] %v776_v2  ;;  %v709_v14 = vmul.f32 %v1230_v8, %v1869_v34  ;;  %v775_v18 = vmax.f32 %v759_v58, 0.0  ;;  %v1922_v22 = vmax.f32 %v565_v49, 1e-24  ;;  %vm715_vm12 = vweird.f32 %v1230_v8 }
 0x261   : > { %v692_v50 = vsub.f32 1.5, %v691_v3  ;;  %v581_v17 = vpop.xlane.xlu0 %580  ;;  %795 = vst [vmem:[%s1720_s3 + $0x28] sm:$0xff] %v779_v9  ;;  %v703_v19 = vmul.f32 %v1871_v35, %v702_v10  ;;  %1235 = vrsqrt.f32 %v1913_v15  ;;  %vm716_vm13 = vmor %vm714_vm11, %vm715_vm12  ;;  %vm634_vm1 = vweird.f32 %v1888_v48 }
 0x262   : > { %v1918_v54 = vmax.f32 %v581_v17, 1e-24  ;;  %v710_v21 = vmul.f32 %v1230_v8, %v709_v14  ;;  %v1232_v23 = vpop.eup %1231  ;;  %791 = vst [vmem:[%s1720_s3 + $0x8] sm:$0xff] %v775_v18  ;;  %vm744_vm7 = vweird.f32 %v1913_v15  ;;  %vm674_vm11 = vweird.f32 %v1922_v22 }
 0x263   : > { %v693_v20 = vmul.f32 %v1873_v40, %v692_v50  ;;  %v707_v24 = vsel %vm706_vm9, %v1871_v35, %v703_v19  ;;  %v659_v29 = vmul.f32 %v1232_v23, %v1896_v55  ;;  %vm665_vm14 = vweird.f32 %v1232_v23 }
 0x264   : > { %1237 = vrsqrt.f32 %v1918_v54  ;;  %v1234_v13 = vpop.eup %1233  ;;  %v768_v26 = vmul.f32 %v707_v24, %v1788_v1  ;;  %v711_v28 = vmul.f32 0.5, %v710_v21  ;;  %vm666_vm2 = vmor %vm664_vm0, %vm665_vm14  ;;  %vm754_vm5 = vweird.f32 %v1918_v54 }
 0x265   : > { %v697_v25 = vsel %vm696_vm10, %v1873_v40, %v693_v20  ;;  %v629_v16 = vmul.f32 %v1234_v13, %v1888_v48  ;;  %v660_v32 = vmul.f32 %v1232_v23, %v659_v29  ;;  %1239 = vrsqrt.f32 %v1922_v22 }
 0x266   : > { %v767_v30 = vmul.f32 %v697_v25, %v1776_v59  ;;  %v784_v31 = vmax.f32 %v768_v26, 0.0  ;;  %v712_v27 = vsub.f32 1.5, %v711_v28  ;;  %vm635_vm15 = vweird.f32 %v1234_v13 }
 0x267   : > { %v630_v53 = vmul.f32 %v1234_v13, %v629_v16  ;;  %v577_v35 = vpop.xlane.xlu1 %576  ;;  %v1236_v1 = vpop.eup %1235  ;;  %v661_v37 = vmul.f32 0.5, %v660_v32  ;;  %vm636_vm3 = vmor %vm634_vm1, %vm635_vm15 }
 0x268   : > { %v783_v33 = vmax.f32 %v767_v30, 0.0  ;;  %800 = vst [vmem:[%s1720_s3 + $0x50] sm:$0xff] %v784_v31  ;;  %v713_v36 = vmul.f32 %v1230_v8, %v712_v27  ;;  %v1939_v56 = vmax.f32 %v577_v35, 1e-24  ;;  %v739_v40 = vmul.f32 %v1236_v1, %v1913_v15 }
 0x269   : > { %v631_v39 = vmul.f32 0.5, %v630_v53  ;;  %v662_v44 = vsub.f32 1.5, %v661_v37  ;;  %vm745_vm4 = vweird.f32 %v1236_v1 }
 0x26a   : > { %v1238_v59 = vpop.eup %1237  ;;  %799 = vst [vmem:[%s1720_s3 + $0x48] sm:$0xff] %v783_v33  ;;  %v717_v41 = vsel %vm716_vm13, %v1230_v8, %v713_v36  ;;  %v740_v51 = vmul.f32 %v1236_v1, %v739_v40  ;;  %1241 = vrsqrt.f32 %v1939_v56  ;;  %vm746_vm8 = vmor %vm744_vm7, %vm745_vm4  ;;  %vm734_vm14 = vweird.f32 %v1939_v56 }
 0x26b   : > { %v749_v45 = vmul.f32 %v1238_v59, %v1918_v54  ;;  %v769_v46 = vmul.f32 %v717_v41, %v1800_v7  ;;  %v632_v47 = vsub.f32 1.5, %v631_v39  ;;  %v1240_v52 = vpop.eup %1239  ;;  %v663_v57 = vmul.f32 %v1232_v23, %v662_v44 }
 0x26c   : > { %v741_v62 = vmul.f32 0.5, %v740_v51  ;;  %v669_v0 = vmul.f32 %v1240_v52, %v1922_v22  ;;  %vm755_vm6 = vweird.f32 %v1238_v59  ;;  %vm675_vm10 = vweird.f32 %v1240_v52 }
 0x26d   : > { %v750_v34 = vmul.f32 %v1238_v59, %v749_v45  ;;  %v785_v38 = vmax.f32 %v769_v46, 0.0  ;;  %v633_v61 = vmul.f32 %v1234_v13, %v632_v47  ;;  %v667_v7 = vsel %vm666_vm2, %v1232_v23, %v663_v57  ;;  %vm756_vm9 = vmor %vm754_vm5, %vm755_vm6 }
 0x26e   : > { %v764_v43 = vmul.f32 %v667_v7, %v1794_v4  ;;  %v742_v55 = vsub.f32 1.5, %v741_v62  ;;  %v670_v48 = vmul.f32 %v1240_v52, %v669_v0  ;;  %vm676_vm12 = vmor %vm674_vm11, %vm675_vm10 }
 0x26f   : > { %v751_v42 = vmul.f32 0.5, %v750_v34  ;;  %801 = vst [vmem:[%s1720_s3 + $0x58] sm:$0xff] %v785_v38  ;;  %v637_v2 = vsel %vm636_vm3, %v1234_v13, %v633_v61 }
 0x270   : > { %v761_v3 = vmul.f32 %v637_v2, %v1798_v6  ;;  %v1242_v8 = vpop.eup %1241  ;;  %v780_v9 = vmax.f32 %v764_v43, 0.0  ;;  %v743_v58 = vmul.f32 %v1236_v1, %v742_v55  ;;  %v671_v10 = vmul.f32 0.5, %v670_v48 }
 0x271   : > { %v752_v60 = vsub.f32 1.5, %v751_v42  ;;  %v729_v50 = vmul.f32 %v1242_v8, %v1939_v56  ;;  %vm735_vm13 = vweird.f32 %v1242_v8 }
 0x272   : > { %v777_v49 = vmax.f32 %v761_v3, 0.0  ;;  %796 = vst [vmem:[%s1720_s3 + $0x30] sm:$0xff] %v780_v9  ;;  %v747_v14 = vsel %vm746_vm8, %v1236_v1, %v743_v58  ;;  %v672_v6 = vsub.f32 1.5, %v671_v10  ;;  %vm736_vm15 = vmor %vm734_vm14, %vm735_vm13 }
 0x273   : > { %v753_v4 = vmul.f32 %v1238_v59, %v752_v60  ;;  %v772_v17 = vmul.f32 %v747_v14, %v1796_v5  ;;  %v730_v19 = vmul.f32 %v1242_v8, %v729_v50 }
 0x274   : > { %793 = vst [vmem:[%s1720_s3 + $0x18] sm:$0xff] %v777_v49  ;;  %v673_v54 = vmul.f32 %v1240_v52, %v672_v6 }
 0x275   : > { %v757_v18 = vsel %vm756_vm9, %v1238_v59, %v753_v4  ;;  %v788_v20 = vmax.f32 %v772_v17, 0.0  ;;  %v731_v21 = vmul.f32 0.5, %v730_v19 }
 0x276   : > { %v773_v15 = vmul.f32 %v757_v18, %v1810_v12  ;;  %v677_v24 = vsel %vm676_vm12, %v1240_v52, %v673_v54 }
 0x277   : > { %804 = vst [vmem:[%s1720_s3 + $0x70] sm:$0xff] %v788_v20  ;;  %v765_v13 = vmul.f32 %v677_v24, %v1808_v11  ;;  %v732_v25 = vsub.f32 1.5, %v731_v21 }
 0x278   : > { %v789_v23 = vmax.f32 %v773_v15, 0.0 }
 0x279   : > { %v781_v5 = vmax.f32 %v765_v13, 0.0  ;;  %v733_v26 = vmul.f32 %v1242_v8, %v732_v25 }
 0x27a   : > { %805 = vst [vmem:[%s1720_s3 + $0x78] sm:$0xff] %v789_v23 }
 0x27b   : > { %797 = vst [vmem:[%s1720_s3 + $0x38] sm:$0xff] %v781_v5  ;;  %v737_v12 = vsel %vm736_vm15, %v1242_v8, %v733_v26 }
 0x27c   : > { %v771_v22 = vmul.f32 %v737_v12, %v1784_v63 }
 0x27e   : > { %v787_v28 = vmax.f32 %v771_v22, 0.0 }
 0x280   : > { %803 = vst [vmem:[%s1720_s3 + $0x68] sm:$0xff] %v787_v28 }
 0x281 PF: > { %s2086_s21 = sld [smem:[#allocation17_spill]]  ;;  %s819_s2 = sshll.u32 %s1720_s3, 4  ;;  %s820_s2 = int_to_ptr.vmem [resolvable:$true] %s819_s2 }
 0x282   : > { %s2088_s24 = sld [smem:[#allocation27_spill]]  ;;  %s807_s12 = scalar_lea.sflag [#allocation5], %s262_s28 }
 0x287   : > { %s966_s29 = sshll.u32 %s2086_s21, 7 }
 0x288   : > { %s2089_s8 = smov %s2088_s24  ;;  %s818_s15 = scalar_lea.hbm %s2088_s24, %s966_s29 }
 0x289   : > { %s821_s10 = sshll.u32 %s818_s15, 4  ;;  %s1353_s4 = scalar_lea.hbm %s2089_s8, 256  ;;  %s822_s10 = int_to_ptr.hbm [resolvable:$true] %s821_s10 }
 0x28a   : > { %s1347_s27 = sshra.s32 %s822_s10, 4  ;;  %s1348_s27 = int_to_ptr.hbm [resolvable:$true] %s1347_s27 }
 0x28b   : > { %s1349_s7 = scalar_lea.hbm %s1348_s27, 128  ;;  %p1354_p11 = scmp.lt.s32.totalorder %s1348_s27, %s2089_s8 }
 0x28c   : > { %p1350_p6 = scmp.ne.s32.totalorder %s1348_s27, %s1349_s7  ;;  %p1355_p0 = scmp.lt.s32.totalorder %s1353_s4, %s1349_s7 }
 0x28e   : > { %p1351_p13 = pnand %p1350_p6, %p1606_p8  ;;  %p1356_p3 = por %p1355_p0, %p1354_p11 }
 0x290   : > { %p1352_p7 = pneg %p1351_p13 }
 0x292   : > { %p1357_p5 = pnand %p1356_p3, %p1352_p7 }
 0x294   : > { %1360 = shalt.err (!%p1357_p5)
}
 0x295   : > { %s1494_s20 = smov 128   ;;  %s1495_s5 = smov 8  }
 0x296   : > { %1071 = dma.vmem_to_hbm [thread:$0]  (%p1606_p8), %s820_s2, 2048, %s822_s10, %s807_s12, %s1494_s20, %s1494_s20, %s1495_s5  }
 0x297 PF: > { %s2090_s28 = sld [smem:[#allocation14_spill]]  ;;  %p1091_p10 = scmp.ge.s32.totalorder %s1487_s25, 2 }
 0x299   : > { %p1085_p2 = pnand %p1091_p10, %p1612_p12 }
 0x29b   : > { %p1086_p9 = pneg %p1085_p2 }
 0x29d   : > { %s836_s3 = sand.u32 1, %s2090_s28  }
 0x29e   : > { %s837_s21 = scalar_lea.sflag [#allocation5], %s836_s3 }
 0x29f   : > { %1430 = dma.done.wait (%p1086_p9), %s837_s21, 2048  }
 0x2a0   : > { %1432 = vsyncadd (%p1086_p9), %s837_s21, 4294965248  ;;  %s22_s25 = sadd.s32 1, %s1487_s25   ;;  %s2093_s26 = sld [smem:[#allocation15_spill]] }
 0x2a1   : > { %p1995_p4 = scmp.ge.s32.totalorder %s22_s25, 6   ;;  %s2094_s14 = sld [smem:[#allocation23_spill]] }
 0x2a2   : > { %s2095_s30 = sld [smem:[#allocation16_spill]]  ;;  %s2100_s12 = smov %s1439_s13 }
 0x2a3   : > { %s2096_s20 = sld [smem:[#allocation24_spill]]  ;;  %s2102_s15 = smov %s1451_s16 }
 0x2a4   : > { %s2097_s24 = sld [smem:[#allocation18_spill]]  ;;  %s2103_s16 = smov %s1455_s17 }
 0x2a5   : > { %s2098_s2 = sld [smem:[#allocation21_spill]]  ;;  %s2104_s17 = smov %s1682_s22 }
 0x2a6   : > { %s2099_s10 = sld [smem:[#allocation22_spill]]  ;;  %s2101_s13 = smov %s2093_s26 }
 0x2a7   : > { %s2105_s18 = smov %s1463_s19  ;;  %s2107_s21 = smov %s1479_s23 }
 0x2a8   : > { %s2106_s19 = smov %s2095_s30  ;;  %21 = sbr.rel (!%p1995_p4) target bundleno = 16 (0x10), region = 102 }
 0x2aa   : > { %s2108_s22 = smov %s2097_s24 }
 0x2ab   : > { %s2109_s23 = smov %s2098_s2 }
 0x2ac   : > { %s2110_s24 = smov %s2099_s10 }
 0x2ad   :  { %843 = vsyncpa [#allocation4], 1 }
 0x2ae   :  { %845 = vsyncpa [#allocation4 + $0x1], 1 }
 0x2af   :  { %846 = vsyncpa [#allocation7], 1 }
 0x2b0   :  { %848 = vsyncpa [#allocation7 + $0x1], 1 }
 0x2b1   :  { %849 = vsyncpa [#allocation5], 1 }
 0x2b2   :  { %851 = vsyncpa [#allocation5 + $0x1], 1 }

</bundles_post_ra>
